<compile_context>
chip_gen: v7x
topology: tpu7x:2x2x1
jax: 0.10.0
libtpu: 0.0.40
codegen_flags: <defaults>
</compile_context>

<pallas_src>
import functools

import jax
import jax.numpy as jnp
from jax.experimental import pallas as pl
from jax.experimental.pallas import tpu as pltpu


LANES = 128
SUBLANES = 8
MAX_TILE_ROWS = 512          # packed-row tile target (~85% of HBM roofline)
NOISE_F32_LIMIT = 2 << 20    # keep the resident noise table f32 below this, else bf16


def _round_up(x, m):
    return (x + m - 1) // m * m


def _cdiv(a, b):
    return (a + b - 1) // b


def _lane_pack_factor(cout):
    # Pack G spatial positions per 128-lane output row when cout divides 128.
    if cout % LANES == 0:
        return 1
    if LANES % cout == 0:
        return LANES // cout
    return 1


def _pick_rows(rows):
    # (tile_rows, padded_rows): single tile up to 1024 packed rows, else 512-row tiles.
    if rows <= 2 * MAX_TILE_ROWS:
        rows_pad = _round_up(rows, SUBLANES)
        return rows_pad, rows_pad
    return MAX_TILE_ROWS, _round_up(rows, MAX_TILE_ROWS)


def _sigmoid(x):
    # exp and approximate reciprocal both run on the EUP (free slot when HBM-bound)
    return pl.reciprocal(1.0 + jnp.exp(-x), approx=True)


# ----------------------------------------------------------------------------
# Pallas kernels
# ----------------------------------------------------------------------------
def _perturb_kernel(x_ref, nz_ref, e_ref, w1_ref, b1_ref, o_ref, *, tm):
    j = pl.program_id(1)
    row0 = pl.multiple_of(j * tm, tm)
    nz = nz_ref[pl.ds(row0, tm), :].astype(jnp.float32)        # resident noise slice
    a = jnp.dot(x_ref[...], e_ref[...], preferred_element_type=jnp.float32)
    a = _sigmoid(a + nz)
    h = jnp.dot(a.astype(jnp.bfloat16), w1_ref[...],
                preferred_element_type=jnp.float32)
    o_ref[...] = _sigmoid(h + b1_ref[...]).astype(o_ref.dtype)


def _perturb_kernel_mix(x_ref, nz_ref, e_ref, w1_ref, b1_ref, w2_ref, b2_ref,
                        o_ref, *, tm):
    j = pl.program_id(1)
    row0 = pl.multiple_of(j * tm, tm)
    nz = nz_ref[pl.ds(row0, tm), :].astype(jnp.float32)        # resident noise slice
    a = jnp.dot(x_ref[...], e_ref[...], preferred_element_type=jnp.float32)
    a = _sigmoid(a + nz)
    h = jnp.dot(a.astype(jnp.bfloat16), w1_ref[...],
                preferred_element_type=jnp.float32)
    h = _sigmoid(h + b1_ref[...])
    o = jnp.dot(h.astype(jnp.bfloat16), w2_ref[...],
                preferred_element_type=jnp.float32)
    o_ref[...] = _sigmoid(o + b2_ref[...]).astype(o_ref.dtype)


def _conv_bn_act_kernel(p_ref, w_ref, b_ref, o_ref):
    y = jnp.dot(p_ref[...], w_ref[...], preferred_element_type=jnp.float32)
    o_ref[...] = _sigmoid(y + b_ref[...]).astype(o_ref.dtype)


# ----------------------------------------------------------------------------
# Parameter folding (eval-mode BN) — synthetic, deterministic
# ----------------------------------------------------------------------------
def _bn_fold(key, c):
    k1, k2, k3, k4 = jax.random.split(key, 4)
    gamma = jax.random.uniform(k1, (c,), minval=0.5, maxval=1.5)
    beta = 0.1 * jax.random.normal(k2, (c,))
    mean = 0.1 * jax.random.normal(k3, (c,))
    var = jax.random.uniform(k4, (c,), minval=0.5, maxval=1.5)
    scale = gamma / jnp.sqrt(var + 1e-5)
    shift = beta - mean * scale
    return scale.astype(jnp.float32), shift.astype(jnp.float32)


def init_perturb_noise_params(key, in_channels, out_channels, nmasks, level,
                              input_size, unique_masks=True, mix_maps=True,
                              noise_type="uniform"):
    assert out_channels % in_channels == 0, "grouped 1x1 conv needs Cout % Cin == 0"
    cin, cout = in_channels, out_channels
    cexp = cin * nmasks
    hw = input_size * input_size
    groups = cin if nmasks != 1 else 1
    cpg_in, cpg_out = cexp // groups, cout // groups

    G = _lane_pack_factor(cout)            # spatial positions packed per output row
    cpack = G * cout
    cpad = _round_up(cpack, LANES)         # == cpack whenever 128 % cout == 0
    rows = _cdiv(hw, G)                    # packed spatial rows per image
    tm, rows_pad = _pick_rows(rows)
    hw_pad = rows_pad * G

    ks = jax.random.split(key, 8)

    # noise masks (PyTorch parameter shape (1, noise_ch, nmasks, H, W))
    noise_ch = cin if unique_masks else 1
    if noise_type == "uniform":
        noise = jax.random.uniform(ks[0], (noise_ch, nmasks, input_size, input_size),
                                   minval=-1.0, maxval=1.0)
    else:
        noise = jax.random.normal(ks[0], (noise_ch, nmasks, input_size, input_size))

    # BN1 over expanded channels (eval mode), folded into expansion + noise
    s1, sh1 = _bn_fold(ks[1], cexp)
    nz = noise if unique_masks else jnp.broadcast_to(
        noise, (cin, nmasks, input_size, input_size))
    nz = nz.reshape(cexp, hw).T                                # (hw, cexp), e = c*nmasks + m
    noise_eff = (level * nz) * s1[None, :] + sh1[None, :]
    noise_eff = jnp.pad(noise_eff, ((0, hw_pad - hw), (0, 0)))
    noise_eff = noise_eff.reshape(rows_pad, G * cexp)          # packed rows
    noise_dtype = (jnp.float32 if noise_eff.size * 4 <= NOISE_F32_LIMIT
                   else jnp.bfloat16)
    noise_eff = noise_eff.astype(noise_dtype)

    # channel-repeat matrix with BN1 scale folded; block-diagonal over packed positions
    src = jnp.arange(cexp) // nmasks
    E = (jnp.arange(cin)[:, None] == src[None, :]).astype(jnp.float32) * s1[None, :]
    e_s1 = jnp.kron(jnp.eye(G, dtype=jnp.float32), E).astype(jnp.bfloat16)

    # grouped 1x1 conv (Cout, Cexp/groups) + bias -> dense block-diagonal, BN2 folded
    wg = jax.random.normal(ks[2], (cout, cpg_in)) * (2.0 / cpg_in) ** 0.5
    b_conv = 0.01 * jax.random.normal(ks[3], (cout,))
    w1 = jnp.zeros((cexp, cout), jnp.float32)
    for g in range(groups):
        blk = wg[g * cpg_out:(g + 1) * cpg_out, :].T
        w1 = w1.at[g * cpg_in:(g + 1) * cpg_in,
                   g * cpg_out:(g + 1) * cpg_out].set(blk)
    s2, sh2 = _bn_fold(ks[4], cout)
    w1 = w1 * s2[None, :]
    b1 = b_conv * s2 + sh2
    w1p = jnp.kron(jnp.eye(G, dtype=jnp.float32), w1)          # (G*cexp, cpack)
    w1p = jnp.pad(w1p, ((0, 0), (0, cpad - cpack))).astype(jnp.bfloat16)
    b1p = jnp.pad(jnp.tile(b1, G), (0, cpad - cpack)).reshape(1, cpad).astype(jnp.float32)

    params = {"e_s1": e_s1, "noise_eff": noise_eff, "w1": w1p, "b1": b1p,
              "G": G, "cpack": cpack, "tm": tm, "rows_pad": rows_pad,
              "out_channels": cout, "input_size": input_size}

    w2_size = 0
    if mix_maps:
        w_mix = jax.random.normal(ks[5], (cout, cout)) * (2.0 / cout) ** 0.5
        b_mix = 0.01 * jax.random.normal(ks[6], (cout,))
        s3, sh3 = _bn_fold(ks[7], cout)
        w2 = w_mix.T * s3[None, :]
        b2 = b_mix * s3 + sh3
        w2p = jnp.kron(jnp.eye(G, dtype=jnp.float32), w2)      # (cpack, cpack)
        # padded rows stay zero, so 0.5 sigmoid values in padded lanes of h never leak
        w2p = jnp.pad(w2p, ((0, cpad - cpack), (0, cpad - cpack))).astype(jnp.bfloat16)
        b2p = jnp.pad(jnp.tile(b2, G), (0, cpad - cpack)).reshape(1, cpad).astype(jnp.float32)
        params["w2"] = w2p
        params["b2"] = b2p
        w2_size = w2p.size

    # VMEM budget: double-buffered inputs/outputs + f32 intermediates; v7x-safe cap
    itemsize = 4 if noise_dtype == jnp.float32 else 2
    vmem_need = (2 * noise_eff.size * itemsize
                 + 2 * tm * G * cin * 2
                 + 2 * tm * cpad * 2
                 + 2 * (e_s1.size + w1p.size + w2_size) * 2
                 + 4 * cpad * 4
                 + tm * (G * cexp + 2 * cpad) * 4)
    params["vmem_limit"] = int(min(64 << 20, max(32 << 20, 2 * vmem_need)))
    return params


def init_perturb_conv_params(key, in_channels, out_channels, filter_size, stride=1):
    if filter_size == 1:
        padding, bias = 0, True
    elif filter_size in (3, 5):
        padding, bias = 1, False
    elif filter_size == 7:
        stride, padding, bias = 2, 3, False
    else:
        raise ValueError("unsupported filter_size")
    k = filter_size * filter_size * in_channels
    G = _lane_pack_factor(out_channels)
    cpack = G * out_channels
    cpad = _round_up(cpack, LANES)
    ks = jax.random.split(key, 3)
    w = jax.random.normal(ks[0], (filter_size, filter_size, in_channels,
                                  out_channels)) * (2.0 / k) ** 0.5
    wmat = w.reshape(k, out_channels)
    b_conv = (0.01 * jax.random.normal(ks[1], (out_channels,)) if bias
              else jnp.zeros((out_channels,)))
    s, sh = _bn_fold(ks[2], out_channels)
    wf = wmat * s[None, :]
    bf = b_conv * s + sh
    wp = jnp.kron(jnp.eye(G, dtype=jnp.float32), wf)           # (G*k, cpack) block-diag
    wp = jnp.pad(wp, ((0, 0), (0, cpad - cpack))).astype(jnp.bfloat16)
    bp = jnp.pad(jnp.tile(bf, G), (0, cpad - cpack)).reshape(1, cpad).astype(jnp.float32)
    return {"w": wp, "b": bp, "filter_size": filter_size, "stride": stride,
            "padding": padding, "out_channels": out_channels, "G": G,
            "cpack": cpack, "k": k}


# ----------------------------------------------------------------------------
# Forward passes
# ----------------------------------------------------------------------------
def perturb_noise_forward(x_nchw, p):
    n, cin, hgt, wid = x_nchw.shape
    hw = hgt * wid
    G, tm, rows_pad = p["G"], p["tm"], p["rows_pad"]
    hw_pad = rows_pad * G
    cexp_p = p["e_s1"].shape[1]      # G * Cin * nmasks
    cpad = p["w1"].shape[1]
    cpack = p["cpack"]
    cout = p["out_channels"]
    mix = "w2" in p
    nblk = rows_pad // tm

    # NCHW -> NHWC rows; per-image spatial padding; pack G positions per row (bf16)
    x = jnp.transpose(x_nchw, (0, 2, 3, 1)).reshape(n, hw, cin)
    x = jnp.pad(x, ((0, 0), (0, hw_pad - hw), (0, 0)))
    x = x.reshape(n * rows_pad, G * cin).astype(jnp.bfloat16)

    in_specs = [
        pl.BlockSpec((tm, G * cin), lambda b, j: (b * nblk + j, 0)),   # x rows
        pl.BlockSpec((rows_pad, cexp_p), lambda b, j: (0, 0)),         # noise: VMEM resident
        pl.BlockSpec((G * cin, cexp_p), lambda b, j: (0, 0)),          # E*s1 (block-diag)
        pl.BlockSpec((cexp_p, cpad), lambda b, j: (0, 0)),             # W1 (block-diag)
        pl.BlockSpec((1, cpad), lambda b, j: (0, 0)),                  # b1
    ]
    args = [x, p["noise_eff"], p["e_s1"], p["w1"], p["b1"]]
    kernel = _perturb_kernel
    if mix:
        in_specs += [pl.BlockSpec((cpad, cpad), lambda b, j: (0, 0)),  # W2 (block-diag)
                     pl.BlockSpec((1, cpad), lambda b, j: (0, 0))]     # b2
        args += [p["w2"], p["b2"]]
        kernel = _perturb_kernel_mix

    out = pl.pallas_call(
        functools.partial(kernel, tm=tm),
        out_shape=jax.ShapeDtypeStruct((n * rows_pad, cpad), jnp.bfloat16),
        grid=(n, nblk),
        in_specs=in_specs,
        out_specs=pl.BlockSpec((tm, cpad), lambda b, j: (b * nblk + j, 0)),
        compiler_params=pltpu.CompilerParams(
            dimension_semantics=("parallel", "parallel"),
            vmem_limit_bytes=p["vmem_limit"]),
    )(*args)

    # unpack: (n*rows_pad, G*cout) -> (n, hw_pad, cout) is a contiguous reshape
    out = out[:, :cpack].reshape(n, hw_pad, cout)[:, :hw, :]
    out = out.reshape(n, hgt, wid, cout)
    return jnp.transpose(out, (0, 3, 1, 2))                            # NCHW, bf16


def perturb_conv_forward(x_nchw, p):
    n, cin, hgt, wid = x_nchw.shape
    fs, stride, pad = p["filter_size"], p["stride"], p["padding"]
    cout, G, cpack, k = p["out_channels"], p["G"], p["cpack"], p["k"]
    cpad = p["w"].shape[1]

    # im2col built directly in bf16 (halves the HBM patch materialization)
    x = jnp.transpose(x_nchw, (0, 2, 3, 1)).astype(jnp.bfloat16)
    xp = jnp.pad(x, ((0, 0), (pad, pad), (pad, pad), (0, 0)))
    hout = (hgt + 2 * pad - fs) // stride + 1
    wout = (wid + 2 * pad - fs) // stride + 1
    patches = [xp[:, dh:dh + stride * hout:stride, dw:dw + stride * wout:stride, :]
               for dh in range(fs) for dw in range(fs)]
    patches = jnp.concatenate(patches, axis=-1)                        # (N,Ho,Wo,K) bf16

    m = n * hout * wout
    rows = _cdiv(m, G)
    tm, rows_pad = _pick_rows(rows)
    mg = rows_pad * G
    pm = patches.reshape(m, k)
    pm = jnp.pad(pm, ((0, mg - m), (0, 0))).reshape(rows_pad, G * k)   # pack G pixels/row

    out = pl.pallas_call(
        _conv_bn_act_kernel,
        out_shape=jax.ShapeDtypeStruct((rows_pad, cpad), jnp.bfloat16),
        grid=(rows_pad // tm,),
        in_specs=[pl.BlockSpec((tm, G * k), lambda i: (i, 0)),
                  pl.BlockSpec((G * k, cpad), lambda i: (0, 0)),
                  pl.BlockSpec((1, cpad), lambda i: (0, 0))],
        out_specs=pl.BlockSpec((tm, cpad), lambda i: (i, 0)),
        compiler_params=pltpu.CompilerParams(dimension_semantics=("parallel",)),
    )(pm, p["w"], p["b"])

    out = out[:, :cpack].reshape(mg, cout)[:m]
    out = out.reshape(n, hout, wout, cout)
    return jnp.transpose(out, (0, 3, 1, 2))                            # NCHW, bf16


# ----------------------------------------------------------------------------
# Demo
# ----------------------------------------------------------------------------
if __name__ == "__main__":
    key = jax.random.PRNGKey(0)
    kx, kp1, kp2 = jax.random.split(key, 3)

    batch, in_ch, spatial = 2, 4, 16
    out_ch, nmasks, level = 32, 16, 0.1

    x = jax.random.normal(kx, (batch, in_ch, spatial, spatial), dtype=jnp.float32)

    # filter_size == 0: noise-mask branch (the defining PerturbLayerFirst path)
    p_noise = init_perturb_noise_params(kp1, in_ch, out_ch, nmasks, level, spatial,
                                        unique_masks=True, mix_maps=True,
                                        noise_type="uniform")
    y_noise = jax.block_until_ready(perturb_noise_forward(x, p_noise))
    assert y_noise.shape == (batch, out_ch, spatial, spatial)
    assert bool(jnp.all(jnp.isfinite(y_noise.astype(jnp.float32))))

    # filter_size == 3: Conv -> BN -> sigmoid branch
    p_conv = init_perturb_conv_params(kp2, in_ch, out_ch, filter_size=3)
    y_conv = jax.block_until_ready(perturb_conv_forward(x, p_conv))
    assert y_conv.shape == (batch, out_ch, spatial, spatial)
    assert bool(jnp.all(jnp.isfinite(y_conv.astype(jnp.float32))))

    print("KERNEL_OK")
</pallas_src>

<mosaic_0001>
module attributes {stable_mosaic.version = 11 : i64} {
  func.func @_perturb_kernel_mix(%arg0: i32, %arg1: i32, %arg2: memref<64x16xbf16, #tpu.memory_space<vmem>>, %arg3: memref<64x256xf32, #tpu.memory_space<vmem>>, %arg4: memref<16x256xbf16, #tpu.memory_space<vmem>>, %arg5: memref<256x128xbf16, #tpu.memory_space<vmem>>, %arg6: memref<1x128xf32, #tpu.memory_space<vmem>>, %arg7: memref<128x128xbf16, #tpu.memory_space<vmem>>, %arg8: memref<1x128xf32, #tpu.memory_space<vmem>>, %arg9: memref<64x128xbf16, #tpu.memory_space<vmem>>) attributes {dimension_semantics = [#tpu.dimension_semantics<parallel>, #tpu.dimension_semantics<parallel>], iteration_bounds = array<i64: 2, 1>, scalar_prefetch = 0 : i64, scratch_operands = 0 : i64, tpu.core_type = #tpu.core_type<tc>, window_params = [{transform_indices = @transform_0, window_bounds = array<i64: 64, 16>}, {pipeline_mode = #tpu.pipeline_mode<synchronous>, transform_indices = @transform_1, window_bounds = array<i64: 64, 256>}, {pipeline_mode = #tpu.pipeline_mode<synchronous>, transform_indices = @transform_2, window_bounds = array<i64: 16, 256>}, {pipeline_mode = #tpu.pipeline_mode<synchronous>, transform_indices = @transform_3, window_bounds = array<i64: 256, 128>}, {pipeline_mode = #tpu.pipeline_mode<synchronous>, transform_indices = @transform_4, window_bounds = array<i64: 1, 128>}, {pipeline_mode = #tpu.pipeline_mode<synchronous>, transform_indices = @transform_5, window_bounds = array<i64: 128, 128>}, {pipeline_mode = #tpu.pipeline_mode<synchronous>, transform_indices = @transform_6, window_bounds = array<i64: 1, 128>}, {transform_indices = @transform_7, window_bounds = array<i64: 64, 128>}]} {
    %c64_i32 = arith.constant 64 : i32
    %0 = arith.muli %arg1, %c64_i32 : i32
    %1 = tpu.assume_multiple %0, 64 : i32
    %2 = arith.index_cast %1 : i32 to index
    %c0 = arith.constant 0 : index
    %3 = vector.load %arg3[%2, %c0] : memref<64x256xf32, #tpu.memory_space<vmem>>, vector<64x256xf32>
    %c0_0 = arith.constant 0 : index
    %c0_1 = arith.constant 0 : index
    %4 = vector.load %arg2[%c0_0, %c0_1] : memref<64x16xbf16, #tpu.memory_space<vmem>>, vector<64x16xbf16>
    %c0_2 = arith.constant 0 : index
    %c0_3 = arith.constant 0 : index
    %5 = vector.load %arg4[%c0_2, %c0_3] : memref<16x256xbf16, #tpu.memory_space<vmem>>, vector<16x256xbf16>
    %cst = arith.constant dense<0.000000e+00> : vector<64x256xf32>
    %6 = tpu.matmul %4, %5, %cst {dimension_numbers = #tpu.dot_dimension_numbers<[1], [0], [0], [1], [0, 0, 1, 1], [], []>} : vector<64x16xbf16>, vector<16x256xbf16>, vector<64x256xf32> -> vector<64x256xf32>
    %7 = arith.addf %6, %3 : vector<64x256xf32>
    %cst_4 = arith.constant 0.000000e+00 : f32
    %8 = vector.broadcast %cst_4 : f32 to vector<64x256xf32>
    %9 = arith.subf %8, %7 : vector<64x256xf32>
    %10 = math.exp %9 : vector<64x256xf32>
    %cst_5 = arith.constant 1.000000e+00 : f32
    %11 = vector.broadcast %cst_5 : f32 to vector<64x256xf32>
    %12 = arith.addf %11, %10 : vector<64x256xf32>
    %13 = tpu.reciprocal %12 {approx = true} : vector<64x256xf32> -> vector<64x256xf32>
    %14 = arith.truncf %13 : vector<64x256xf32> to vector<64x256xbf16>
    %c0_6 = arith.constant 0 : index
    %c0_7 = arith.constant 0 : index
    %15 = vector.load %arg5[%c0_6, %c0_7] : memref<256x128xbf16, #tpu.memory_space<vmem>>, vector<256x128xbf16>
    %cst_8 = arith.constant dense<0.000000e+00> : vector<64x128xf32>
    %16 = tpu.matmul %14, %15, %cst_8 {dimension_numbers = #tpu.dot_dimension_numbers<[1], [0], [0], [1], [0, 0, 1, 1], [], []>} : vector<64x256xbf16>, vector<256x128xbf16>, vector<64x128xf32> -> vector<64x128xf32>
    %c0_9 = arith.constant 0 : index
    %c0_10 = arith.constant 0 : index
    %17 = vector.load %arg6[%c0_9, %c0_10] : memref<1x128xf32, #tpu.memory_space<vmem>>, vector<1x128xf32>
    %18 = vector.broadcast %17 : vector<1x128xf32> to vector<64x128xf32>
    %19 = arith.addf %16, %18 : vector<64x128xf32>
    %cst_11 = arith.constant 0.000000e+00 : f32
    %20 = vector.broadcast %cst_11 : f32 to vector<64x128xf32>
    %21 = arith.subf %20, %19 : vector<64x128xf32>
    %22 = math.exp %21 : vector<64x128xf32>
    %cst_12 = arith.constant 1.000000e+00 : f32
    %23 = vector.broadcast %cst_12 : f32 to vector<64x128xf32>
    %24 = arith.addf %23, %22 : vector<64x128xf32>
    %25 = tpu.reciprocal %24 {approx = true} : vector<64x128xf32> -> vector<64x128xf32>
    %26 = arith.truncf %25 : vector<64x128xf32> to vector<64x128xbf16>
    %c0_13 = arith.constant 0 : index
    %c0_14 = arith.constant 0 : index
    %27 = vector.load %arg7[%c0_13, %c0_14] : memref<128x128xbf16, #tpu.memory_space<vmem>>, vector<128x128xbf16>
    %cst_15 = arith.constant dense<0.000000e+00> : vector<64x128xf32>
    %28 = tpu.matmul %26, %27, %cst_15 {dimension_numbers = #tpu.dot_dimension_numbers<[1], [0], [0], [1], [0, 0, 1, 1], [], []>} : vector<64x128xbf16>, vector<128x128xbf16>, vector<64x128xf32> -> vector<64x128xf32>
    %c0_16 = arith.constant 0 : index
    %c0_17 = arith.constant 0 : index
    %29 = vector.load %arg8[%c0_16, %c0_17] : memref<1x128xf32, #tpu.memory_space<vmem>>, vector<1x128xf32>
    %30 = vector.broadcast %29 : vector<1x128xf32> to vector<64x128xf32>
    %31 = arith.addf %28, %30 : vector<64x128xf32>
    %cst_18 = arith.constant 0.000000e+00 : f32
    %32 = vector.broadcast %cst_18 : f32 to vector<64x128xf32>
    %33 = arith.subf %32, %31 : vector<64x128xf32>
    %34 = math.exp %33 : vector<64x128xf32>
    %cst_19 = arith.constant 1.000000e+00 : f32
    %35 = vector.broadcast %cst_19 : f32 to vector<64x128xf32>
    %36 = arith.addf %35, %34 : vector<64x128xf32>
    %37 = tpu.reciprocal %36 {approx = true} : vector<64x128xf32> -> vector<64x128xf32>
    %38 = arith.truncf %37 : vector<64x128xf32> to vector<64x128xbf16>
    %c0_20 = arith.constant 0 : index
    %c0_21 = arith.constant 0 : index
    %39 = vector.load %arg9[%c0_20, %c0_21] : memref<64x128xbf16, #tpu.memory_space<vmem>>, vector<64x128xbf16>
    tpu.vector_store %arg9[%c0_20, %c0_21], %38 {strides = array<i32>} : memref<64x128xbf16, #tpu.memory_space<vmem>>, vector<64x128xbf16>,
    return
  }
  func.func @transform_0(%arg0: i32, %arg1: i32) -> (i32, i32) {
    %c1_i32 = arith.constant 1 : i32
    %0 = arith.muli %arg0, %c1_i32 : i32
    %1 = arith.addi %0, %arg1 : i32
    %c0_i32 = arith.constant 0 : i32
    %c0_i32_0 = arith.constant 0 : i32
    return %1, %c0_i32 : i32, i32
  }
  func.func @transform_1(%arg0: i32, %arg1: i32) -> (i32, i32) {
    %c0_i32 = arith.constant 0 : i32
    %c0_i32_0 = arith.constant 0 : i32
    %c0_i32_1 = arith.constant 0 : i32
    return %c0_i32, %c0_i32_0 : i32, i32
  }
  func.func @transform_2(%arg0: i32, %arg1: i32) -> (i32, i32) {
    %c0_i32 = arith.constant 0 : i32
    %c0_i32_0 = arith.constant 0 : i32
    %c0_i32_1 = arith.constant 0 : i32
    return %c0_i32, %c0_i32_0 : i32, i32
  }
  func.func @transform_3(%arg0: i32, %arg1: i32) -> (i32, i32) {
    %c0_i32 = arith.constant 0 : i32
    %c0_i32_0 = arith.constant 0 : i32
    %c0_i32_1 = arith.constant 0 : i32
    return %c0_i32, %c0_i32_0 : i32, i32
  }
  func.func @transform_4(%arg0: i32, %arg1: i32) -> (i32, i32) {
    %c0_i32 = arith.constant 0 : i32
    %c0_i32_0 = arith.constant 0 : i32
    %c0_i32_1 = arith.constant 0 : i32
    return %c0_i32, %c0_i32_0 : i32, i32
  }
  func.func @transform_5(%arg0: i32, %arg1: i32) -> (i32, i32) {
    %c0_i32 = arith.constant 0 : i32
    %c0_i32_0 = arith.constant 0 : i32
    %c0_i32_1 = arith.constant 0 : i32
    return %c0_i32, %c0_i32_0 : i32, i32
  }
  func.func @transform_6(%arg0: i32, %arg1: i32) -> (i32, i32) {
    %c0_i32 = arith.constant 0 : i32
    %c0_i32_0 = arith.constant 0 : i32
    %c0_i32_1 = arith.constant 0 : i32
    return %c0_i32, %c0_i32_0 : i32, i32
  }
  func.func @transform_7(%arg0: i32, %arg1: i32) -> (i32, i32) {
    %c1_i32 = arith.constant 1 : i32
    %0 = arith.muli %arg0, %c1_i32 : i32
    %1 = arith.addi %0, %arg1 : i32
    %c0_i32 = arith.constant 0 : i32
    %c0_i32_0 = arith.constant 0 : i32
    return %1, %c0_i32 : i32, i32
  }
}

</mosaic_0001>

<bundles_post_ra>
// kernel: tpu_custom_call.1
= control target key start
LH: loop header
LB: loop body
LE: loop exit
PB: predicated region body
PF: predicated region fallthrough
CT: control target
= control target key end

     0   :  { %12 = vsyncpa [#allocation3], 0  ;;  %s1973_s0 = inlined_call_operand.vmem [shape: bf16[128,16], index: 0, kind: input, shape index: {}]   ;;  %s1974_s1 = inlined_call_operand.hbm [shape: f32[64,256], index: 1, kind: input, shape index: {}]   ;;  %s1975_s2 = inlined_call_operand.vmem [shape: bf16[16,256], index: 2, kind: input, shape index: {}]   ;;  %s1976_s3 = inlined_call_operand.hbm [shape: bf16[256,128], index: 3, kind: input, shape index: {}]   ;;  %s1977_s4 = inlined_call_operand.vmem [shape: f32[1,128], index: 4, kind: input, shape index: {}]   ;;  %s1978_s5 = inlined_call_operand.vmem [shape: bf16[128,128], index: 5, kind: input, shape index: {}]   ;;  %s1979_s6 = inlined_call_operand.vmem [shape: f32[1,128], index: 6, kind: input, shape index: {}]   ;;  %s1980_s7 = inlined_call_operand.hbm [shape: bf16[128,128], index: 7, kind: output, shape index: {}]  }
   0x1   :  { %13 = vsyncpa [#allocation6], 0 }
   0x2   :  { %14 = vsyncpa [#allocation4], 0 }
   0x3   :  { %16 = vsyncpa [#allocation4 + $0x1], 0  ;;  %s1744_s24 = smov 0   ;;  %s1746_s25 = smov 0  }
   0x4   :  { %s1748_s26 = smov 0   ;;  %s1750_s27 = smov 0  }
   0x5   :  { %s1752_s28 = smov 0   ;;  %s1754_s29 = smov 0  }
   0x6 LB: > { %1987 = sst [smem:[#allocation11_spill]] %s1688_s28  ;;  %s1139_s30 = sadd.s32 4294967295, %s1692_s29   ;;  %s1692_s29 = sphi %s1754_s29, %s22_s29   ;;  %s1688_s28 = sphi %s1752_s28, %s2001_s28   ;;  %s1684_s27 = sphi %s1750_s27, %s2000_s27   ;;  %s1680_s26 = sphi %s1748_s26, %s2004_s26   ;;  %s1676_s25 = sphi %s1746_s25, %s2003_s25   ;;  %s1672_s24 = sphi %s1744_s24, %s2002_s24  }
   0x7   : > { %s1140_s8 = sadd.s32 4294967294, %s1692_s29   ;;  %s34_s9 = sadd.s32 1, %s1688_s28 }
   0x8   : > { %s197_s10 = sadd.s32 1, %s1680_s26  ;;  %p36_p0 = scmp.ge.s32.totalorder %s34_s9, 2 }
   0x9   : > { %p207_p1 = scmp.ne.s32.totalorder %s1680_s26, %s1676_s25  ;;  %p208_p2 = scmp.eq.s32.totalorder %s1139_s30, 1 }
   0xa   : > { %p213_p3 = scmp.ne.s32.totalorder %s1676_s25, %s1672_s24  ;;  %s2006_s9 = smov (%p36_p0, %s34_s9), 0 }
   0xb   : > { %1988 = sst [smem:[#allocation12_spill]] %s2006_s9  ;;  %p1784_p4 = por %p208_p2, %p207_p1 }
   0xc   : > { %p214_p5 = scmp.eq.s32.totalorder %s1140_s8, 1  ;;  %s194_s12 = ssub.s32 %s1688_s28, %s2006_s9 }
   0xd   : > { %s1989_s11 = scalar_select %p1784_p4, 1, 0 }
   0xe   : > { %p1141_p6 = scmp.ge.s32.totalorder %s1692_s29, 1  ;;  %p195_p7 = scmp.eq.s32.totalorder %s194_s12, 0 }
   0xf   : > { %p1791_p8 = por %p214_p5, %p213_p3  ;;  %p221_p9 = scmp.lt.s32.totalorder %s1692_s29, 3 }
  0x10   : > { %s1797_s14 = scalar_select %p195_p7, %s1680_s26, %s197_s10  }
  0x11   : > { %s1990_s13 = scalar_select %p1791_p8, 1, 0 }
  0x12   : > { %1991 = sst [smem:[#allocation13_spill]] %s1797_s14  ;;  %p1799_p10 = pnand %p1141_p6, %p221_p9 }
  0x13   : > { %p1803_p11 = scmp.eq.s32.totalorder %s1139_s30, 0  ;;  %s1694_s17 = smov [#allocation2]  }
  0x14   : > { %s1992_s15 = scalar_select %p1799_p10, 1, 0 }
  0x15   : > { %s1993_s16 = scalar_select %p1803_p11, 1, 0 }
  0x16   : > { %p1318_p12 = pneg %p1799_p10  ;;  %s233_s18 = sshll.u32 %s1694_s17, 4  ;;  %s234_s18 = int_to_ptr.vmem [resolvable:$true] %s233_s18 }
  0x17   : > { %s1695_s20 = smov [#allocation5]   ;;  %s1550_s30 = scalar_lea.hbm %s1974_s1, 2048 }
  0x18   : > { %p1811_p13 = pnand %p1803_p11, %p1318_p12  ;;  %s249_s21 = sshll.u32 %s1695_s20, 4  ;;  %s1815_s21 = int_to_ptr.vmem [resolvable:$true] %s249_s21 }
  0x19   : > { %p1551_p0 = scmp.ne.s32.totalorder %s1974_s1, %s1550_s30  ;;  %p1557_p5 = scmp.lt.u32.totalorder %s1550_s30, %s1974_s1 }
  0x1a   : > { %p1552_p1 = pneg %p1811_p13 }
  0x1c   : > { %p1553_p2 = pnand %p1552_p1, %p1551_p0 }
  0x1e   : > { %p1554_p3 = pneg %p1553_p2 }
  0x20   : > { %p1559_p6 = pnand %p1557_p5, %p1554_p3 }
  0x22   : > { %1562 = shalt.err (!%p1559_p6)
}
  0x23   : > { %s1563_s20 = scalar_lea.vmem %s234_s18, 2048  ;;  %p1571_p8 = scmp.lt.s32.totalorder %s234_s18, %s234_s18 }
  0x24   : > { %p1564_p7 = scmp.ne.s32.totalorder %s234_s18, %s1563_s20  ;;  %p1572_p4 = scmp.lt.s32.totalorder %s1563_s20, %s1563_s20 }
  0x26   : > { %p1566_p9 = pnand %p1564_p7, %p1552_p1  ;;  %p1573_p11 = por %p1572_p4, %p1571_p8 }
  0x28   : > { %p1567_p12 = pneg %p1566_p9 }
  0x2a   : > { %p1574_p10 = pnand %p1573_p11, %p1567_p12 }
  0x2c   : > { %1577 = shalt.err (!%p1574_p10)
}
  0x2d   : > { %s1696_s22 = smov 256   ;;  %s1697_s23 = smov 16  }
  0x2e   : > { %1321 = dma.hbm_to_vmem [thread:$0]  (!%p1811_p13), %s1974_s1, 2048, %s234_s18, [#allocation3], %s1696_s22, %s1696_s22, %s1697_s23  }
  0x2f   : > { %s1578_s17 = scalar_lea.hbm %s1976_s3, 2048 }
  0x30   : > { %p1579_p0 = scmp.ne.s32.totalorder %s1976_s3, %s1578_s17  ;;  %p1585_p10 = scmp.lt.u32.totalorder %s1578_s17, %s1976_s3 }
  0x32   : > { %p1581_p4 = pnand %p1579_p0, %p1552_p1 }
  0x34   : > { %p1582_p8 = pneg %p1581_p4 }
  0x36   : > { %p1587_p11 = pnand %p1585_p10, %p1582_p8 }
  0x38   : > { %1590 = shalt.err (!%p1587_p11)
}
  0x39   : > { %s1591_s18 = scalar_lea.vmem %s1815_s21, 2048  ;;  %p1599_p6 = scmp.lt.s32.totalorder %s1815_s21, %s1815_s21 }
  0x3a   : > { %p1592_p2 = scmp.ne.s32.totalorder %s1815_s21, %s1591_s18  ;;  %p1600_p7 = scmp.lt.s32.totalorder %s1591_s18, %s1591_s18 }
  0x3c   : > { %p1594_p3 = pnand %p1592_p2, %p1552_p1  ;;  %p1601_p9 = por %p1600_p7, %p1599_p6 }
  0x3e   : > { %p1595_p5 = pneg %p1594_p3 }
  0x40   : > { %p1602_p12 = pnand %p1601_p9, %p1595_p5 }
  0x42   : > { %1605 = shalt.err (!%p1602_p12)
}
  0x43   : > { %s1698_s28 = smov 64   ;;  %s1699_s9 = smov 4  }
  0x44   : > { %1324 = dma.hbm_to_vmem [thread:$0]  (!%p1811_p13), %s1976_s3, 2048, %s1815_s21, [#allocation6], %s1698_s28, %s1698_s28, %s1699_s9  }
  0x45   : > { %p1995_p0 = scmp.ne.s32.totalorder %s1992_s15, 0 }
  0x46   : > { %p1996_p1 = scmp.ne.s32.totalorder (!%p1995_p0), %s1993_s16, 0 }
  0x47   : > { %285 = sbr.rel (%p1995_p0) target bundleno = 872 (0x368), region = 48 }
  0x4e   : > { %1659 = dma.done.wait (%p1996_p1), [#allocation3], 2048  }
  0x4f   : > { %1661 = vsyncadd (%p1996_p1), [#allocation3], 4294965248 }
  0x50   : > { %1663 = dma.done.wait (%p1996_p1), [#allocation6], 2048  }
  0x51   : > { %1665 = vsyncadd (%p1996_p1), [#allocation6], 4294965248  ;;  %s1149_s19 = sshll.u32 %s1684_s27, 3  ;;  %v1700_v0 = vmov 0   ;;  %v1391_v1 = vld [vmem:[%s1975_s2 + $0x4] ss:$8 sps:$4 sm:$0xff]  }
  0x52   : > { %440 = vmatprep.mubr.bf16.mxu0 %v1700_v0  ;;  %p324_p13 = scmp.lt.s32.totalorder %s1149_s19, 15  ;;  %v1393_v2 = vld [vmem:[%s1975_s2] ss:$8 sps:$4 sm:$0xff]   ;;  %408 = vmatprep.subr.bf16.mxu0 %v1391_v1  ;;  %vm395_vm0 = vcmask 130048   ;;  %v1402_v11 = vld [vmem:[#allocation5 + $0x50] sm:$0xff]   ;;  %v1404_v13 = vld [vmem:[#allocation5 + $0x58] sm:$0xff]  }
  0x53   : > { %409 = vmatpush1.bf16.msra.mxu0 %v1393_v2  ;;  %v1398_v7 = vld [vmem:[#allocation5 + $0x40] sm:$0xff]   ;;  %v1400_v9 = vld [vmem:[#allocation5 + $0x48] sm:$0xff]   ;;  %v1403_v12 = vld [vmem:[#allocation5 + $0x10] sm:$0xff]   ;;  %s319_s9 = sand.u32 1, %s1676_s25   ;;  %p1997_p8 = scmp.ne.s32.totalorder %s1989_s11, 0 }
  0x54   : > { %s2008_s19 = smov (!%p324_p13, %s1149_s19), 15  ;;  %v1399_v8 = vld [vmem:[#allocation5] sm:$0xff]   ;;  %1232 = vmatprep.subr.bf16.mxu1 %v1398_v7  ;;  %v1401_v10 = vld [vmem:[#allocation5 + $0x8] sm:$0xff]   ;;  %v1405_v14 = vld [vmem:[#allocation5 + $0x18] sm:$0xff]   ;;  %s1148_s14 = sshll.u32 %s319_s9, 5 }
  0x55   : > { %s1150_s15 = sshll.u32 %s2008_s19, 2  ;;  %1233 = vmatpush3.bf16.msra.mxu1 %v1399_v8  ;;  %v1406_v15 = vld [vmem:[#allocation5 + $0x60] sm:$0xff]   ;;  %v1408_v17 = vld [vmem:[#allocation5 + $0x68] sm:$0xff]   ;;  %v1410_v19 = vld [vmem:[#allocation5 + $0x70] sm:$0xff]   ;;  %s321_s22 = scalar_lea.vmem [#allocation7], %s1148_s14 }
  0x56   : > { %s327_s30 = scalar_lea.vmem %s1973_s0, %s1150_s15  ;;  %1234 = vmatprep.subr.bf16.mxu1 %v1400_v9  ;;  %v1407_v16 = vld [vmem:[#allocation5 + $0x20] sm:$0xff]   ;;  %v1409_v18 = vld [vmem:[#allocation5 + $0x28] sm:$0xff]   ;;  %v1411_v20 = vld [vmem:[#allocation5 + $0x30] sm:$0xff]   ;;  %s1208_s19 = sshll.u32 %s1684_s27, 9 }
  0x57   : > { %v1394_v3 = vld [vmem:[%s327_s30] sm:$0xff]   ;;  %v1395_v4 = vld [vmem:[%s327_s30 + $0x8] sm:$0xff]   ;;  %v1396_v5 = vld [vmem:[%s327_s30 + $0x10] sm:$0xff]   ;;  %s1044_s15 = sshll.u32 %s321_s22, 4  ;;  %s1927_s27 = scalar_lea.sflag [#allocation4], %s319_s9  ;;  %s1923_s15 = int_to_ptr.vmem [resolvable:$true] %s1044_s15 }
  0x58   : > { %1157 = vmatmul.mubr.msk.bf16.vlgmr.msra.gmra.mrb[0].mxu0 %vm395_vm0, %v1394_v3  ;;  %v1397_v6 = vld [vmem:[%s327_s30 + $0x18] sm:$0xff]   ;;  %v339_v23 = vld [vmem:[#allocation2] sm:$0xff]  ;;  %v340_v24 = vld [vmem:[#allocation2 + $0x8] sm:$0xff]  ;;  %s1921_s30 = scalar_lea.hbm %s1980_s7, %s1208_s19  ;;  %s1606_s8 = scalar_lea.vmem %s1923_s15, 512 }
  0x59   : > { %450 = vmatprep.mubr.bf16.mxu0 %v1700_v0  ;;  %1235 = vmatpush3.bf16.msra.mxu1 %v1401_v10  ;;  %v1412_v21 = vld [vmem:[#allocation5 + $0x78] sm:$0xff]   ;;  %v341_v26 = vld [vmem:[#allocation2 + $0x10] sm:$0xff]  ;;  %v343_v41 = vld [vmem:[#allocation2 + $0x20] sm:$0xff]  ;;  %p1607_p4 = scmp.ne.s32.totalorder %s1923_s15, %s1606_s8  ;;  %s1701_s10 = smov [#allocation7]  }
  0x5a   : > { %1236 = vmatprep.subr.bf16.mxu1 %v1402_v11  ;;  %v1413_v22 = vld [vmem:[#allocation5 + $0x38] sm:$0xff]   ;;  %v344_v43 = vld [vmem:[#allocation2 + $0x28] sm:$0xff]  ;;  %v345_v46 = vld [vmem:[#allocation2 + $0x30] sm:$0xff]  ;;  %s1610_s12 = sshll.u32 %s1701_s10, 4  ;;  %s1611_s12 = int_to_ptr.vmem [resolvable:$false] %s1610_s12 }
  0x5b   : > { %v342_v29 = vld [vmem:[#allocation2 + $0x18] sm:$0xff]  ;;  %v347_v61 = vld [vmem:[#allocation2 + $0x40] sm:$0xff]  ;;  %v348_v63 = vld [vmem:[#allocation2 + $0x48] sm:$0xff]  ;;  %p1608_p10 = pnand %p1607_p4, %p1997_p8  ;;  %s1612_s17 = scalar_lea.vmem %s1611_s12, 1024 }
  0x5c   : > { %v346_v49 = vld [vmem:[#allocation2 + $0x38] sm:$0xff]  ;;  %v349_v2 = vld [vmem:[#allocation2 + $0x50] sm:$0xff]  ;;  %p1613_p2 = scmp.lt.s32.totalorder %s1923_s15, %s1611_s12  ;;  %p1614_p3 = scmp.lt.s32.totalorder %s1612_s17, %s1606_s8 }
  0x5d   : > { %1237 = vmatpush3.bf16.msra.mxu1 %v1403_v12  ;;  %p1609_p11 = pneg %p1608_p10 }
  0x5e   : > { %1238 = vmatprep.subr.bf16.mxu1 %v1404_v13  ;;  %p1615_p5 = por %p1614_p3, %p1613_p2 }
  0x60   : > { %1158 = vmatmul.mubr.msk.bf16.gmra.mrb[4].mxu0 %vm395_vm0, %v1395_v4  ;;  %p1616_p6 = pnand %p1615_p5, %p1609_p11 }
  0x61   : > { %460 = vmatprep.mubr.bf16.mxu0 %v1700_v0  ;;  %1239 = vmatpush3.bf16.msra.mxu1 %v1405_v14 }
  0x62   : > { %1240 = vmatprep.subr.bf16.mxu1 %v1406_v15 }
  0x65   : > { %1241 = vmatpush3.bf16.msra.mxu1 %v1407_v16 }
  0x66   : > { %1242 = vmatprep.subr.bf16.mxu1 %v1408_v17 }
  0x68   : > { %1159 = vmatmul.mubr.msk.bf16.gmra.mrb[8].mxu0 %vm395_vm0, %v1396_v5 }
  0x69   : > { %470 = vmatprep.mubr.bf16.mxu0 %v1700_v0  ;;  %1243 = vmatpush3.bf16.msra.mxu1 %v1409_v18 }
  0x6a   : > { %1244 = vmatprep.subr.bf16.mxu1 %v1410_v19 }
  0x6d   : > { %1245 = vmatpush3.bf16.msra.mxu1 %v1411_v20 }
  0x6e   : > { %1246 = vmatprep.subr.bf16.mxu1 %v1412_v21 }
  0x70   : > { %1160 = vmatmul.mubr.msk.bf16.gmra.mrb[12].mxu0 %vm395_vm0, %v1397_v6  ;;  %v350_v6 = vld [vmem:[#allocation2 + $0x58] sm:$0xff] }
  0x71   : > { %1247 = vmatpush3.bf16.msra.mxu1 %v1413_v22 }
 0x12b   : > { %v442_v25 = vpop.f32.mrb[0].mxu0 }
 0x12c   : > { %v443_v27 = vadd.f32 %v442_v25, %v339_v23  ;;  %v444_v28 = vpop.f32.mrb[1].mxu0  ;;  %v351_v25 = vld [vmem:[#allocation2 + $0x60] sm:$0xff] }
 0x12d   : > { %v445_v30 = vadd.f32 %v444_v28, %v340_v24  ;;  %v446_v31 = vpop.f32.mrb[2].mxu0 }
 0x12e   : > { %v481_v32 = vsub.f32 0.0, %v443_v27  ;;  %v447_v33 = vadd.f32 %v446_v31, %v341_v26  ;;  %v448_v34 = vpop.f32.mrb[3].mxu0  ;;  %v352_v27 = vld [vmem:[#allocation2 + $0x68] sm:$0xff] }
 0x12f   : > { %v482_v35 = vsub.f32 0.0, %v445_v30  ;;  %v449_v36 = vadd.f32 %v448_v34, %v342_v29  ;;  %v353_v30 = vld [vmem:[#allocation2 + $0x70] sm:$0xff]  ;;  %v354_v34 = vld [vmem:[#allocation2 + $0x78] sm:$0xff] }
 0x130   : > { %v497_v37 = vmul.f32 1.442695, %v481_v32  ;;  %v483_v38 = vsub.f32 0.0, %v447_v33 }
 0x131   : > { %v499_v39 = vmul.f32 1.442695, %v482_v35  ;;  %v484_v40 = vsub.f32 0.0, %v449_v36 }
 0x132   : > { %1422 = vpow2.f32 %v497_v37  ;;  %v501_v42 = vmul.f32 1.442695, %v483_v38 }
 0x133   : > { %1424 = vpow2.f32 %v499_v39  ;;  %v503_v44 = vmul.f32 1.442695, %v484_v40  ;;  %v452_v45 = vpop.f32.mrb[4].mxu0 }
 0x134   : > { %1426 = vpow2.f32 %v501_v42  ;;  %v453_v47 = vadd.f32 %v452_v45, %v343_v41  ;;  %v454_v48 = vpop.f32.mrb[5].mxu0 }
 0x135   : > { %1428 = vpow2.f32 %v503_v44  ;;  %v455_v50 = vadd.f32 %v454_v48, %v344_v43  ;;  %v456_v51 = vpop.f32.mrb[6].mxu0 }
 0x136   : > { %v485_v52 = vsub.f32 0.0, %v453_v47  ;;  %v457_v53 = vadd.f32 %v456_v51, %v345_v46  ;;  %v458_v54 = vpop.f32.mrb[7].mxu0 }
 0x137   : > { %v486_v55 = vsub.f32 0.0, %v455_v50  ;;  %v459_v56 = vadd.f32 %v458_v54, %v346_v49 }
 0x138   : > { %v505_v57 = vmul.f32 1.442695, %v485_v52  ;;  %v487_v58 = vsub.f32 0.0, %v457_v53 }
 0x139   : > { %v507_v59 = vmul.f32 1.442695, %v486_v55  ;;  %v488_v60 = vsub.f32 0.0, %v459_v56 }
 0x13a   : > { %1430 = vpow2.f32 %v505_v57  ;;  %v509_v62 = vmul.f32 1.442695, %v487_v58 }
 0x13b   : > { %1432 = vpow2.f32 %v507_v59  ;;  %v511_v0 = vmul.f32 1.442695, %v488_v60  ;;  %v462_v1 = vpop.f32.mrb[8].mxu0 }
 0x13c   : > { %v1423_v3 = vpop.eup %1422  ;;  %1434 = vpow2.f32 %v509_v62  ;;  %v463_v4 = vadd.f32 %v462_v1, %v347_v61  ;;  %v464_v5 = vpop.f32.mrb[9].mxu0 }
 0x13d   : > { %v1425_v7 = vpop.eup %1424  ;;  %v529_v8 = vadd.f32 1.0, %v1423_v3  ;;  %1436 = vpow2.f32 %v511_v0  ;;  %v465_v9 = vadd.f32 %v464_v5, %v348_v63  ;;  %v466_v10 = vpop.f32.mrb[10].mxu0 }
 0x13e   : > { %v1427_v11 = vpop.eup %1426  ;;  %v530_v12 = vadd.f32 1.0, %v1425_v7  ;;  %v489_v13 = vsub.f32 0.0, %v463_v4  ;;  %v467_v14 = vadd.f32 %v466_v10, %v349_v2  ;;  %v468_v15 = vpop.f32.mrb[11].mxu0 }
 0x13f   : > { %v1429_v16 = vpop.eup %1428  ;;  %1438 = vrcp.f32 %v529_v8  ;;  %v531_v17 = vadd.f32 1.0, %v1427_v11  ;;  %v490_v18 = vsub.f32 0.0, %v465_v9  ;;  %v469_v19 = vadd.f32 %v468_v15, %v350_v6 }
 0x140   : > { %1440 = vrcp.f32 %v530_v12  ;;  %v532_v20 = vadd.f32 1.0, %v1429_v16  ;;  %v513_v21 = vmul.f32 1.442695, %v489_v13  ;;  %v491_v22 = vsub.f32 0.0, %v467_v14 }
 0x141   : > { %1442 = vrcp.f32 %v531_v17  ;;  %v515_v23 = vmul.f32 1.442695, %v490_v18  ;;  %v492_v24 = vsub.f32 0.0, %v469_v19 }
 0x142   : > { %1444 = vrcp.f32 %v532_v20  ;;  %v517_v26 = vmul.f32 1.442695, %v491_v22 }
 0x143   : > { %1446 = vpow2.f32 %v513_v21  ;;  %v519_v28 = vmul.f32 1.442695, %v492_v24  ;;  %v472_v29 = vpop.f32.mrb[12].mxu0 }
 0x144   : > { %v1431_v31 = vpop.eup %1430  ;;  %1448 = vpow2.f32 %v515_v23  ;;  %v473_v32 = vadd.f32 %v472_v29, %v351_v25  ;;  %v474_v33 = vpop.f32.mrb[13].mxu0 }
 0x145   : > { %v1433_v35 = vpop.eup %1432  ;;  %v533_v36 = vadd.f32 1.0, %v1431_v31  ;;  %1450 = vpow2.f32 %v517_v26  ;;  %v475_v37 = vadd.f32 %v474_v33, %v352_v27  ;;  %v476_v38 = vpop.f32.mrb[14].mxu0  ;;  %v1414_v31 = vld [vmem:[%s1978_s5] sm:$0xff]   ;;  %v1416_v33 = vld [vmem:[%s1978_s5 + $0x10] sm:$0xff]  }
 0x146   : > { %v1435_v39 = vpop.eup %1434  ;;  %v534_v40 = vadd.f32 1.0, %v1433_v35  ;;  %1452 = vpow2.f32 %v519_v28  ;;  %v493_v41 = vsub.f32 0.0, %v473_v32  ;;  %v477_v42 = vadd.f32 %v476_v38, %v353_v30  ;;  %v478_v43 = vpop.f32.mrb[15].mxu0  ;;  %1284 = vmatprep.subr.bf16.mxu0 %v1414_v31  ;;  %v1415_v32 = vld [vmem:[%s1978_s5 + $0x8] sm:$0xff]   ;;  %v1418_v35 = vld [vmem:[%s1978_s5 + $0x20] sm:$0xff]   ;;  %v1421_v38 = vld [vmem:[%s1978_s5 + $0x38] sm:$0xff]  }
 0x147   : > { %v1437_v44 = vpop.eup %1436  ;;  %1454 = vrcp.f32 %v533_v36  ;;  %v535_v45 = vadd.f32 1.0, %v1435_v39  ;;  %v494_v46 = vsub.f32 0.0, %v475_v37  ;;  %v479_v47 = vadd.f32 %v478_v43, %v354_v34  ;;  %1285 = vmatpush3.bf16.msra.mxu0 %v1414_v31  ;;  %v1417_v34 = vld [vmem:[%s1978_s5 + $0x18] sm:$0xff]   ;;  %v1419_v36 = vld [vmem:[%s1978_s5 + $0x28] sm:$0xff]   ;;  %v1420_v37 = vld [vmem:[%s1978_s5 + $0x30] sm:$0xff]  }
 0x148   : > { %1456 = vrcp.f32 %v534_v40  ;;  %v536_v48 = vadd.f32 1.0, %v1437_v44  ;;  %v521_v49 = vmul.f32 1.442695, %v493_v41  ;;  %v495_v50 = vsub.f32 0.0, %v477_v42  ;;  %1286 = vmatprep.subr.bf16.mxu0 %v1415_v32  ;;  %v1161_v40 = vld [vmem:[%s1977_s4] ss:$0 sm:$0xff] }
 0x149   : > { %v1439_v51 = vpop.eup %1438  ;;  %1458 = vrcp.f32 %v535_v45  ;;  %v523_v52 = vmul.f32 1.442695, %v494_v46  ;;  %v496_v53 = vsub.f32 0.0, %v479_v47 }
 0x14a   : > { %v1441_v54 = vpop.eup %1440  ;;  %1460 = vrcp.f32 %v536_v48  ;;  %v525_v55 = vmul.f32 1.442695, %v495_v50 }
 0x14b   : > { %v1443_v56 = vpop.eup %1442  ;;  %1462 = vpow2.f32 %v521_v49  ;;  %v527_v57 = vmul.f32 1.442695, %v496_v53  ;;  %1287 = vmatpush3.bf16.msra.mxu0 %v1415_v32 }
 0x14c   : > { %v1445_v58 = vpop.eup %1444  ;;  %1464 = vpow2.f32 %v523_v52  ;;  %v561_v59 = vpack.c.bf16 %v1443_v56, %v1439_v51  ;;  %1288 = vmatprep.subr.bf16.mxu0 %v1416_v33 }
 0x14d   : > { %v1447_v60 = vpop.eup %1446  ;;  %1466 = vpow2.f32 %v525_v55  ;;  %v562_v61 = vpack.c.bf16 %v1445_v58, %v1441_v54 }
 0x14e   : > { %v1449_v62 = vpop.eup %1448  ;;  %v537_v63 = vadd.f32 1.0, %v1447_v60  ;;  %1468 = vpow2.f32 %v527_v57 }
 0x14f   : > { %v1451_v0 = vpop.eup %1450  ;;  %v538_v1 = vadd.f32 1.0, %v1449_v62  ;;  %736 = vmatprep.mubr.bf16.mxu1 %v562_v61  ;;  %1289 = vmatpush3.bf16.msra.mxu0 %v1416_v33 }
 0x150   : > { %v1453_v2 = vpop.eup %1452  ;;  %1470 = vrcp.f32 %v537_v63  ;;  %v539_v3 = vadd.f32 1.0, %v1451_v0  ;;  %737 = vmatmul.mubr.bf16.vlgmr.msra.gmra.mrb[0].mxu1 %v561_v59  ;;  %1290 = vmatprep.subr.bf16.mxu0 %v1417_v34 }
 0x151   : > { %v1455_v4 = vpop.eup %1454  ;;  %1472 = vrcp.f32 %v538_v1  ;;  %v540_v5 = vadd.f32 1.0, %v1453_v2 }
 0x152   : > { %v1457_v6 = vpop.eup %1456  ;;  %1474 = vrcp.f32 %v539_v3 }
 0x153   : > { %v1459_v7 = vpop.eup %1458  ;;  %1476 = vrcp.f32 %v540_v5  ;;  %1291 = vmatpush3.bf16.msra.mxu0 %v1417_v34 }
 0x154   : > { %v1461_v8 = vpop.eup %1460  ;;  %v563_v9 = vpack.c.bf16 %v1459_v7, %v1455_v4  ;;  %1292 = vmatprep.subr.bf16.mxu0 %v1418_v35 }
 0x155   : > { %v1463_v10 = vpop.eup %1462  ;;  %v564_v11 = vpack.c.bf16 %v1461_v8, %v1457_v6 }
 0x156   : > { %v1465_v12 = vpop.eup %1464  ;;  %v541_v13 = vadd.f32 1.0, %v1463_v10 }
 0x157   : > { %v1467_v14 = vpop.eup %1466  ;;  %v542_v15 = vadd.f32 1.0, %v1465_v12  ;;  %744 = vmatprep.mubr.bf16.mxu1 %v564_v11  ;;  %1293 = vmatpush3.bf16.msra.mxu0 %v1418_v35 }
 0x158   : > { %v1469_v16 = vpop.eup %1468  ;;  %1478 = vrcp.f32 %v541_v13  ;;  %v543_v17 = vadd.f32 1.0, %v1467_v14  ;;  %745 = vmatmul.mubr.bf16.gmra.mrb[4].mxu1 %v563_v9  ;;  %1294 = vmatprep.subr.bf16.mxu0 %v1419_v36 }
 0x159   : > { %1480 = vrcp.f32 %v542_v15  ;;  %v544_v18 = vadd.f32 1.0, %v1469_v16 }
 0x15a   : > { %v1471_v19 = vpop.eup %1470  ;;  %1482 = vrcp.f32 %v543_v17 }
 0x15b   : > { %v1473_v20 = vpop.eup %1472  ;;  %1484 = vrcp.f32 %v544_v18  ;;  %1295 = vmatpush3.bf16.msra.mxu0 %v1419_v36 }
 0x15c   : > { %v1475_v21 = vpop.eup %1474  ;;  %1296 = vmatprep.subr.bf16.mxu0 %v1420_v37 }
 0x15d   : > { %v1477_v22 = vpop.eup %1476  ;;  %v565_v23 = vpack.c.bf16 %v1475_v21, %v1471_v19 }
 0x15e   : > { %v566_v24 = vpack.c.bf16 %v1477_v22, %v1473_v20 }
 0x15f   : > { %1297 = vmatpush3.bf16.msra.mxu0 %v1420_v37 }
 0x160   : > { %752 = vmatprep.mubr.bf16.mxu1 %v566_v24  ;;  %1298 = vmatprep.subr.bf16.mxu0 %v1421_v38 }
 0x161   : > { %753 = vmatmul.mubr.bf16.gmra.mrb[8].mxu1 %v565_v23 }
 0x162   : > { %v1479_v25 = vpop.eup %1478 }
 0x163   : > { %v1481_v26 = vpop.eup %1480  ;;  %1299 = vmatpush3.bf16.msra.mxu0 %v1421_v38 }
 0x164   : > { %v1483_v27 = vpop.eup %1482 }
 0x165   : > { %v1485_v28 = vpop.eup %1484  ;;  %v567_v29 = vpack.c.bf16 %v1483_v27, %v1479_v25 }
 0x166   : > { %v568_v30 = vpack.c.bf16 %v1485_v28, %v1481_v26 }
 0x168   : > { %760 = vmatprep.mubr.bf16.mxu1 %v568_v30 }
 0x169   : > { %761 = vmatmul.mubr.bf16.gmra.mrb[12].mxu1 %v567_v29 }
 0x223   : > { %v1248_v39 = vpop.f32.mrb[0].mxu1 }
 0x224   : > { %v1249_v41 = vpop.f32.mrb[1].mxu1 }
 0x225   : > { %v1250_v42 = vadd.f32 %v1249_v41, %v1248_v39  ;;  %v1251_v43 = vpop.f32.mrb[2].mxu1 }
 0x226   : > { %v1252_v44 = vpop.f32.mrb[3].mxu1 }
 0x227   : > { %v739_v45 = vadd.f32 %v1250_v42, %v1161_v40  ;;  %v1253_v46 = vadd.f32 %v1252_v44, %v1251_v43 }
 0x229   : > { %v769_v47 = vsub.f32 0.0, %v739_v45  ;;  %v742_v48 = vadd.f32 %v1253_v46, %v1161_v40 }
 0x22b   : > { %v777_v49 = vmul.f32 1.442695, %v769_v47  ;;  %v770_v50 = vsub.f32 0.0, %v742_v48  ;;  %v1254_v51 = vpop.f32.mrb[4].mxu1 }
 0x22c   : > { %v1255_v52 = vpop.f32.mrb[5].mxu1 }
 0x22d   : > { %1486 = vpow2.f32 %v777_v49  ;;  %v779_v53 = vmul.f32 1.442695, %v770_v50  ;;  %v1256_v54 = vadd.f32 %v1255_v52, %v1254_v51  ;;  %v1257_v55 = vpop.f32.mrb[6].mxu1  ;;  %v1178_v52 = vld [vmem:[%s1979_s6] ss:$0 sm:$0xff] }
 0x22e   : > { %v1258_v56 = vpop.f32.mrb[7].mxu1 }
 0x22f   : > { %1488 = vpow2.f32 %v779_v53  ;;  %v747_v57 = vadd.f32 %v1256_v54, %v1161_v40  ;;  %v1259_v58 = vadd.f32 %v1258_v56, %v1257_v55 }
 0x231   : > { %v771_v59 = vsub.f32 0.0, %v747_v57  ;;  %v750_v60 = vadd.f32 %v1259_v58, %v1161_v40 }
 0x233   : > { %v781_v61 = vmul.f32 1.442695, %v771_v59  ;;  %v772_v62 = vsub.f32 0.0, %v750_v60 }
 0x234   : > { %v1260_v63 = vpop.f32.mrb[8].mxu1 }
 0x235   : > { %1490 = vpow2.f32 %v781_v61  ;;  %v783_v0 = vmul.f32 1.442695, %v772_v62  ;;  %v1261_v1 = vpop.f32.mrb[9].mxu1 }
 0x236   : > { %v1262_v2 = vadd.f32 %v1261_v1, %v1260_v63  ;;  %v1263_v3 = vpop.f32.mrb[10].mxu1 }
 0x237   : > { %v1487_v4 = vpop.eup %1486  ;;  %1492 = vpow2.f32 %v783_v0  ;;  %v1264_v5 = vpop.f32.mrb[11].mxu1 }
 0x238   : > { %v793_v6 = vadd.f32 1.0, %v1487_v4  ;;  %v755_v7 = vadd.f32 %v1262_v2, %v1161_v40  ;;  %v1265_v8 = vadd.f32 %v1264_v5, %v1263_v3 }
 0x239   : > { %v1489_v9 = vpop.eup %1488 }
 0x23a   : > { %v794_v10 = vadd.f32 1.0, %v1489_v9  ;;  %v773_v11 = vsub.f32 0.0, %v755_v7  ;;  %v758_v12 = vadd.f32 %v1265_v8, %v1161_v40  ;;  %1494 = vrcp.f32 %v793_v6 }
 0x23c   : > { %1496 = vrcp.f32 %v794_v10  ;;  %v785_v13 = vmul.f32 1.442695, %v773_v11  ;;  %v774_v14 = vsub.f32 0.0, %v758_v12  ;;  %v1266_v15 = vpop.f32.mrb[12].mxu1 }
 0x23d   : > { %v1267_v16 = vpop.f32.mrb[13].mxu1 }
 0x23e   : > { %1498 = vpow2.f32 %v785_v13  ;;  %v787_v17 = vmul.f32 1.442695, %v774_v14  ;;  %v1268_v18 = vadd.f32 %v1267_v16, %v1266_v15  ;;  %v1269_v19 = vpop.f32.mrb[14].mxu1 }
 0x23f   : > { %v1491_v20 = vpop.eup %1490  ;;  %v1270_v21 = vpop.f32.mrb[15].mxu1 }
 0x240   : > { %v795_v22 = vadd.f32 1.0, %v1491_v20  ;;  %1500 = vpow2.f32 %v787_v17  ;;  %v763_v23 = vadd.f32 %v1268_v18, %v1161_v40  ;;  %v1271_v24 = vadd.f32 %v1270_v21, %v1269_v19 }
 0x241   : > { %v1493_v25 = vpop.eup %1492 }
 0x242   : > { %v796_v26 = vadd.f32 1.0, %v1493_v25  ;;  %v775_v27 = vsub.f32 0.0, %v763_v23  ;;  %v766_v28 = vadd.f32 %v1271_v24, %v1161_v40  ;;  %1502 = vrcp.f32 %v795_v22 }
 0x244   : > { %1504 = vrcp.f32 %v796_v26  ;;  %v789_v29 = vmul.f32 1.442695, %v775_v27  ;;  %v776_v30 = vsub.f32 0.0, %v766_v28  ;;  %v1495_v31 = vpop.eup %1494 }
 0x246   : > { %v1497_v32 = vpop.eup %1496  ;;  %1506 = vpow2.f32 %v789_v29  ;;  %v791_v33 = vmul.f32 1.442695, %v776_v30 }
 0x247   : > { %v809_v34 = vpack.c.bf16 %v1497_v32, %v1495_v31 }
 0x248   : > { %v1499_v35 = vpop.eup %1498  ;;  %1508 = vpow2.f32 %v791_v33 }
 0x249   : > { %v797_v36 = vadd.f32 1.0, %v1499_v35  ;;  %1300 = vmatprep.mubr.bf16.mxu0 %v809_v34 }
 0x24a   : > { %v1501_v37 = vpop.eup %1500 }
 0x24b   : > { %v798_v38 = vadd.f32 1.0, %v1501_v37  ;;  %1510 = vrcp.f32 %v797_v36 }
 0x24c   : > { %v1503_v39 = vpop.eup %1502 }
 0x24d   : > { %1512 = vrcp.f32 %v798_v38 }
 0x24e   : > { %v1505_v41 = vpop.eup %1504 }
 0x24f   : > { %v810_v40 = vpack.c.bf16 %v1505_v41, %v1503_v39 }
 0x250   : > { %v1507_v42 = vpop.eup %1506 }
 0x251   : > { %v799_v43 = vadd.f32 1.0, %v1507_v42  ;;  %1301 = vmatmul.mubr.bf16.vlgmr.msra.gmra.mrb[16].mxu0 %v810_v40 }
 0x252   : > { %v1509_v44 = vpop.eup %1508 }
 0x253   : > { %v800_v45 = vadd.f32 1.0, %v1509_v44  ;;  %1514 = vrcp.f32 %v799_v43 }
 0x255   : > { %1516 = vrcp.f32 %v800_v45  ;;  %v1511_v46 = vpop.eup %1510 }
 0x257   : > { %v1513_v47 = vpop.eup %1512 }
 0x258   : > { %v811_v48 = vpack.c.bf16 %v1513_v47, %v1511_v46 }
 0x25a   : > { %1304 = vmatprep.mubr.bf16.mxu0 %v811_v48 }
 0x25d   : > { %v1515_v49 = vpop.eup %1514 }
 0x25f   : > { %v1517_v50 = vpop.eup %1516 }
 0x260   : > { %v812_v51 = vpack.c.bf16 %v1517_v50, %v1515_v49 }
 0x262   : > { %1305 = vmatmul.mubr.bf16.gmra.mrb[20].mxu0 %v812_v51 }
 0x324   : > { %v1302_v53 = vpop.f32.mrb[16].mxu0 }
 0x325   : > { %v927_v54 = vadd.f32 %v1302_v53, %v1178_v52  ;;  %v918_v55 = vpop.f32.mrb[17].mxu0 }
 0x326   : > { %v919_v56 = vadd.f32 %v1178_v52, %v918_v55  ;;  %v1303_v57 = vpop.f32.mrb[18].mxu0 }
 0x327   : > { %v951_v58 = vsub.f32 0.0, %v927_v54  ;;  %v930_v59 = vadd.f32 %v1303_v57, %v1178_v52  ;;  %v921_v60 = vpop.f32.mrb[19].mxu0 }
 0x328   : > { %v949_v61 = vsub.f32 0.0, %v919_v56  ;;  %v922_v62 = vadd.f32 %v1178_v52, %v921_v60 }
 0x329   : > { %v961_v63 = vmul.f32 1.442695, %v951_v58  ;;  %v952_v0 = vsub.f32 0.0, %v930_v59 }
 0x32a   : > { %v957_v1 = vmul.f32 1.442695, %v949_v61  ;;  %v950_v2 = vsub.f32 0.0, %v922_v62 }
 0x32b   : > { %1518 = vpow2.f32 %v961_v63  ;;  %v963_v3 = vmul.f32 1.442695, %v952_v0 }
 0x32c   : > { %1520 = vpow2.f32 %v957_v1  ;;  %v959_v4 = vmul.f32 1.442695, %v950_v2 }
 0x32d   : > { %1522 = vpow2.f32 %v963_v3 }
 0x32e   : > { %1524 = vpow2.f32 %v959_v4 }
 0x335   : > { %v1519_v5 = vpop.eup %1518  ;;  %v1306_v6 = vpop.f32.mrb[20].mxu0 }
 0x336   : > { %v1521_v7 = vpop.eup %1520  ;;  %v975_v8 = vadd.f32 1.0, %v1519_v5  ;;  %v943_v9 = vadd.f32 %v1306_v6, %v1178_v52  ;;  %v934_v10 = vpop.f32.mrb[21].mxu0 }
 0x337   : > { %v1523_v11 = vpop.eup %1522  ;;  %v973_v12 = vadd.f32 1.0, %v1521_v7  ;;  %v935_v13 = vadd.f32 %v1178_v52, %v934_v10  ;;  %v1307_v14 = vpop.f32.mrb[22].mxu0 }
 0x338   : > { %v1525_v15 = vpop.eup %1524  ;;  %1526 = vrcp.f32 %v975_v8  ;;  %v976_v16 = vadd.f32 1.0, %v1523_v11  ;;  %v955_v17 = vsub.f32 0.0, %v943_v9  ;;  %v946_v18 = vadd.f32 %v1307_v14, %v1178_v52  ;;  %v937_v19 = vpop.f32.mrb[23].mxu0 }
 0x339   : > { %1528 = vrcp.f32 %v973_v12  ;;  %v974_v20 = vadd.f32 1.0, %v1525_v15  ;;  %v953_v21 = vsub.f32 0.0, %v935_v13  ;;  %v938_v22 = vadd.f32 %v1178_v52, %v937_v19 }
 0x33a   : > { %1530 = vrcp.f32 %v976_v16  ;;  %v969_v23 = vmul.f32 1.442695, %v955_v17  ;;  %v956_v24 = vsub.f32 0.0, %v946_v18 }
 0x33b   : > { %1532 = vrcp.f32 %v974_v20  ;;  %v965_v25 = vmul.f32 1.442695, %v953_v21  ;;  %v954_v26 = vsub.f32 0.0, %v938_v22 }
 0x33c   : > { %1534 = vpow2.f32 %v969_v23  ;;  %v971_v27 = vmul.f32 1.442695, %v956_v24 }
 0x33d   : > { %1536 = vpow2.f32 %v965_v25  ;;  %v967_v28 = vmul.f32 1.442695, %v954_v26 }
 0x33e   : > { %1538 = vpow2.f32 %v971_v27 }
 0x33f   : > { %1540 = vpow2.f32 %v967_v28 }
 0x342   : > { %v1527_v29 = vpop.eup %1526 }
 0x343   : > { %v1529_v30 = vpop.eup %1528 }
 0x344   : > { %v1531_v31 = vpop.eup %1530 }
 0x345   : > { %v1533_v32 = vpop.eup %1532  ;;  %v1217_v33 = vpack.c.bf16 %v1531_v31, %v1527_v29 }
 0x346   : > { %v1535_v34 = vpop.eup %1534  ;;  %v1212_v35 = vpack.c.bf16 %v1533_v32, %v1529_v30 }
 0x347   : > { %v1537_v36 = vpop.eup %1536  ;;  %1229 = vst [vmem:[%s321_s22 + $0x8] sm:$0xff] %v1217_v33   ;;  %v979_v37 = vadd.f32 1.0, %v1535_v34 }
 0x348   : > { %v1539_v38 = vpop.eup %1538  ;;  %1213 = vst [vmem:[%s321_s22] sm:$0xff] %v1212_v35   ;;  %v977_v39 = vadd.f32 1.0, %v1537_v36 }
 0x349   : > { %v1541_v41 = vpop.eup %1540  ;;  %1542 = vrcp.f32 %v979_v37  ;;  %v980_v40 = vadd.f32 1.0, %v1539_v38 }
 0x34a   : > { %1544 = vrcp.f32 %v977_v39  ;;  %v978_v42 = vadd.f32 1.0, %v1541_v41 }
 0x34b   : > { %1546 = vrcp.f32 %v980_v40 }
 0x34c   : > { %1548 = vrcp.f32 %v978_v42 }
 0x353   : > { %v1543_v43 = vpop.eup %1542 }
 0x354   : > { %v1545_v44 = vpop.eup %1544 }
 0x355   : > { %v1547_v45 = vpop.eup %1546 }
 0x356   : > { %v1549_v46 = vpop.eup %1548  ;;  %v1227_v47 = vpack.c.bf16 %v1547_v45, %v1543_v43 }
 0x357   : > { %v1222_v48 = vpack.c.bf16 %v1549_v46, %v1545_v44 }
 0x358   : > { %1231 = vst [vmem:[%s321_s22 + $0x18] sm:$0xff] %v1227_v47  }
 0x359   : > { %1230 = vst [vmem:[%s321_s22 + $0x10] sm:$0xff] %v1222_v48  }
 0x35a   : > { %1619 = shalt.err (!%p1616_p6)
}
 0x35b   : > { %s1620_s16 = scalar_lea.hbm %s1921_s30, 512  ;;  %s1624_s28 = scalar_lea.hbm %s1980_s7, 1024 }
 0x35c   : > { %p1621_p7 = scmp.ne.s32.totalorder %s1921_s30, %s1620_s16  ;;  %p1625_p0 = scmp.lt.u32.totalorder %s1921_s30, %s1980_s7 }
 0x35d   : > { %p1626_p1 = scmp.lt.u32.totalorder %s1624_s28, %s1620_s16  ;;  %p1628_p4 = scmp.lt.u32.totalorder %s1620_s16, %s1921_s30 }
 0x35e   : > { %p1622_p9 = pnand %p1621_p7, %p1997_p8 }
 0x35f   : > { %p1627_p13 = por %p1626_p1, %p1625_p0 }
 0x360   : > { %p1623_p12 = pneg %p1622_p9 }
 0x361   : > { %p1629_p10 = por %p1628_p4, %p1627_p13 }
 0x363   : > { %p1630_p11 = pnand %p1629_p10, %p1623_p12 }
 0x365   : > { %1633 = shalt.err (!%p1630_p11)
}
 0x366   : > { %s1702_s22 = smov 64   ;;  %s1703_s19 = smov 4  }
 0x367   : > { %1316 = dma.vmem_to_hbm [thread:$0]  (%p1997_p8), %s1923_s15, 512, %s1921_s30, %s1927_s27, %s1702_s22, %s1702_s22, %s1703_s19  }
 0x368 PF: > { %p1333_p2 = scmp.ge.s32.totalorder %s1692_s29, 2  ;;  %s1059_s21 = sand.u32 1, %s1672_s24  }
 0x369   : > { %p1998_p3 = scmp.ne.s32.totalorder %s1990_s13, 0  ;;  %s1060_s23 = scalar_lea.sflag [#allocation4], %s1059_s21 }
 0x36b   : > { %p1326_p5 = pnand %p1333_p2, %p1998_p3 }
 0x36d   : > { %1667 = dma.done.wait (!%p1326_p5), %s1060_s23, 512  }
 0x36e   : > { %1669 = vsyncadd (!%p1326_p5), %s1060_s23, 4294966784  ;;  %s22_s29 = sadd.s32 1, %s1692_s29   ;;  %s1999_s8 = sld [smem:[#allocation13_spill]] }
 0x36f   : > { %p19_p6 = scmp.ge.s32.totalorder %s22_s29, 4   ;;  %s2000_s27 = sld [smem:[#allocation11_spill]] }
 0x370   : > { %s2001_s28 = sld [smem:[#allocation12_spill]]  ;;  %s2002_s24 = smov %s1676_s25 }
 0x371   : > { %s2003_s25 = smov %s1680_s26  ;;  %21 = sbr.rel (!%p19_p6) target bundleno = 6 (0x6), region = 93 }
 0x374   : > { %s2004_s26 = smov %s1999_s8 }
 0x378   :  { %1065 = vsyncpa [#allocation3], 1 }
 0x379   :  { %1067 = vsyncpa [#allocation3 + $0x1], 1 }
 0x37a   :  { %1068 = vsyncpa [#allocation6], 1 }
 0x37b   :  { %1069 = vsyncpa [#allocation4], 1 }
 0x37c   :  { %1071 = vsyncpa [#allocation4 + $0x1], 1 }

</bundles_post_ra>
